<compile_context>
chip_gen: v7x
topology: tpu7x:2x2x1
jax: 0.10.0
libtpu: 0.0.40
codegen_flags: <defaults>
</compile_context>

<pallas_src>
import math
import functools

import jax
import jax.numpy as jnp
from jax import lax
from jax.experimental import pallas as pl
from jax.experimental.pallas import tpu as pltpu


# --------------------------------------------------------------------------
# Chip-aware VMEM budget (v5e/v6e: 128 MiB phys -> ~96 MiB; v7x: 64 MiB -> 48 MiB)
# --------------------------------------------------------------------------
@functools.lru_cache(maxsize=1)
def _vmem_limit_bytes():
    try:
        cap = pltpu.get_tpu_info().vmem_capacity_bytes
        return int(min(cap * 3 // 4, 100 * 1024 * 1024))
    except Exception:
        return 32 * 1024 * 1024  # conservative fallback, safe on every generation


# --------------------------------------------------------------------------
# Tile-size helpers (keep (8,128) legality; keep parallel grids >= 2 when possible)
# --------------------------------------------------------------------------
def _pick_m_tile(m, target=512):
    if m % 8 != 0:
        return m                       # odd size: full extent (always legal)
    if m <= target:
        if m >= 16:                    # split in two so both TCs get work
            return ((m // 2 + 7) // 8) * 8
        return m
    return target


def _pick_n_tile(n, target=512):
    if n <= 2 * target or n % 128 != 0:
        return n                       # small / odd: full extent (lane-dense)
    return target


def _pick_q_tile(s, target=256):
    if s <= target or s % 8 != 0:
        return s
    return target


# --------------------------------------------------------------------------
# (M, N)-tiled linear kernel: y = x @ w + b   (bf16 operands, f32 accumulate)
# --------------------------------------------------------------------------
def _linear_kernel(x_ref, w_ref, b_ref, o_ref):
    acc = jnp.dot(x_ref[...], w_ref[...], preferred_element_type=jnp.float32)
    o_ref[...] = (acc + b_ref[...]).astype(o_ref.dtype)


def linear(x, w, b, *, out_dtype, tm=512, tn=512):
    """x: (M, K), w: (K, N), b: (N,)  ->  (M, N)."""
    M, K = x.shape
    K2, N = w.shape
    assert K == K2
    tm = _pick_m_tile(M, tm)
    tn = _pick_n_tile(N, tn)
    b2 = b.reshape(1, N).astype(jnp.float32)
    return pl.pallas_call(
        _linear_kernel,
        out_shape=jax.ShapeDtypeStruct((M, N), out_dtype),
        grid=(pl.cdiv(M, tm), pl.cdiv(N, tn)),
        in_specs=[
            pl.BlockSpec((tm, K), lambda i, j: (i, 0)),   # activations, row-tiled
            pl.BlockSpec((K, tn), lambda i, j: (0, j)),   # weight, N-tiled
            pl.BlockSpec((1, tn), lambda i, j: (0, j)),   # bias, N-tiled
        ],
        out_specs=pl.BlockSpec((tm, tn), lambda i, j: (i, j)),
        compiler_params=pltpu.CompilerParams(
            dimension_semantics=("parallel", "parallel"),
            vmem_limit_bytes=_vmem_limit_bytes(),
        ),
    )(x, w, b2)


# --------------------------------------------------------------------------
# Multi-head attention kernel with fused out-projection.
# q is pre-scaled by 1/sqrt(head_dim) (folded into the projection weights).
# q/k/v are views of the SAME fused (B, S, 3E) qkv tensor, selected per-BlockSpec.
# --------------------------------------------------------------------------
def _attn_kernel(q_ref, k_ref, v_ref, wo_ref, bo_ref, o_ref, *rest,
                 num_heads, head_dim, need_weights):
    if need_weights:
        w_ref, acc = rest
    else:
        w_ref = None
        (acc,) = rest

    for h in range(num_heads):                 # static unroll over heads
        lo, hi = h * head_dim, (h + 1) * head_dim
        qh = q_ref[0, :, lo:hi]                # (tq, Dh) bf16, pre-scaled
        kh = k_ref[0, :, lo:hi]                # (S,  Dh) bf16
        vh = v_ref[0, :, lo:hi]                # (S,  Dh) bf16
        # Contract last axes of q and k directly (no k.T relayout), f32 accumulate.
        s = lax.dot_general(qh, kh, (((1,), (1,)), ((), ())),
                            preferred_element_type=jnp.float32)        # (tq, S)
        m = jnp.max(s, axis=-1, keepdims=True)
        e = jnp.exp(s - m)
        denom = jnp.sum(e, axis=-1, keepdims=True)
        if need_weights:
            # Exact division on the weights that are returned (PyTorch parity).
            attn = e / denom
            w_ref[0, h] = attn.astype(w_ref.dtype)
            oh = jnp.dot(attn.astype(vh.dtype), vh,
                         preferred_element_type=jnp.float32)           # (tq, Dh)
        else:
            # Normalise AFTER the AV matmul: tq*Dh multiplies instead of tq*S.
            oh = jnp.dot(e.astype(vh.dtype), vh,
                         preferred_element_type=jnp.float32)
            oh = oh * pl.reciprocal(denom, approx=True)
        acc[:, lo:hi] = oh                     # per-head write to VMEM scratch slab

    # Fused out-projection + single lane-dense (tq, E) store.
    proj = jnp.dot(acc[...].astype(wo_ref.dtype), wo_ref[...],
                   preferred_element_type=jnp.float32) + bo_ref[...]
    o_ref[0] = proj.astype(o_ref.dtype)


def attention(qkv, w_out, b_out, num_heads, *, need_weights=True,
              out_dtype=jnp.float32, tq=256):
    """qkv: (B, S, 3E) fused projections (q pre-scaled); w_out: (E, E); b_out: (E,)."""
    B, S, E3 = qkv.shape
    E = E3 // 3
    Dh = E // num_heads
    tq = _pick_q_tile(S, tq)
    bo2 = b_out.reshape(1, E).astype(jnp.float32)
    kernel = functools.partial(_attn_kernel, num_heads=num_heads,
                               head_dim=Dh, need_weights=need_weights)

    out_shape = [jax.ShapeDtypeStruct((B, S, E), out_dtype)]
    out_specs = [pl.BlockSpec((1, tq, E), lambda b, qi: (b, qi, 0))]
    if need_weights:
        out_shape.append(jax.ShapeDtypeStruct((B, num_heads, S, S), jnp.float32))
        out_specs.append(
            pl.BlockSpec((1, num_heads, tq, S), lambda b, qi: (b, 0, qi, 0)))

    # TODO(synk): add a kv-tiled online-softmax (flash) path for need_weights=False
    # so VMEM stays independent of S at long sequence lengths.
    res = pl.pallas_call(
        kernel,
        out_shape=tuple(out_shape),
        grid=(B, pl.cdiv(S, tq)),
        in_specs=[
            # q / k / v are picked out of the fused qkv via the last-axis block index.
            pl.BlockSpec((1, tq, E), lambda b, qi: (b, qi, 0)),   # q tile
            pl.BlockSpec((1, S, E),  lambda b, qi: (b, 0, 1)),    # full K for batch b
            pl.BlockSpec((1, S, E),  lambda b, qi: (b, 0, 2)),    # full V for batch b
            pl.BlockSpec((E, E),     lambda b, qi: (0, 0)),       # out-proj weight
            pl.BlockSpec((1, E),     lambda b, qi: (0, 0)),       # out-proj bias
        ],
        out_specs=tuple(out_specs),
        scratch_shapes=[pltpu.VMEM((tq, E), jnp.float32)],        # concat-heads slab
        compiler_params=pltpu.CompilerParams(
            dimension_semantics=("parallel", "parallel"),
            vmem_limit_bytes=_vmem_limit_bytes(),
        ),
    )(qkv, qkv, qkv, w_out, bo2)

    if need_weights:
        return res[0], res[1]
    o = res[0] if isinstance(res, (tuple, list)) else res
    return o, None


# --------------------------------------------------------------------------
# Parameter init (deterministic, mirroring PyTorch default init schemes)
# --------------------------------------------------------------------------
def init_params(key, input_dim, dim_value, num_heads):
    E = dim_value * num_heads
    ks = jax.random.split(key, 6)

    def lin_init(k, fan_in, fan_out):
        bound = 1.0 / math.sqrt(fan_in)
        kw, kb = jax.random.split(k)
        w = jax.random.uniform(kw, (fan_out, fan_in), jnp.float32, -bound, bound)
        b = jax.random.uniform(kb, (fan_out,), jnp.float32, -bound, bound)
        return w, b

    q_w, q_b = lin_init(ks[0], input_dim, E)
    k_w, k_b = lin_init(ks[1], input_dim, E)
    v_w, v_b = lin_init(ks[2], input_dim, E)

    # nn.MultiheadAttention: in_proj_weight xavier_uniform, in_proj_bias zeros,
    # out_proj.bias zeros (out_proj.weight keeps the Linear default).
    xav = math.sqrt(6.0 / (E + 3 * E))
    in_proj_w = jax.random.uniform(ks[3], (3 * E, E), jnp.float32, -xav, xav)
    in_proj_b = jnp.zeros((3 * E,), jnp.float32)
    out_w, _ = lin_init(ks[4], E, E)
    out_b = jnp.zeros((E,), jnp.float32)

    return dict(q_w=q_w, q_b=q_b, k_w=k_w, k_b=k_b, v_w=v_w, v_b=v_b,
                in_proj_w=in_proj_w, in_proj_b=in_proj_b,
                out_w=out_w, out_b=out_b)


# --------------------------------------------------------------------------
# One-time algebraic folding of the stacked projections:
#   q2 = (x @ q_w^T + q_b) @ wq^T + bq  ==  x @ (wq @ q_w)^T + (wq @ q_b + bq)
# The 1/sqrt(head_dim) scale is folded into the q path.  Done once, outside jit.
# --------------------------------------------------------------------------
def fold_params(p, num_heads, compute_dtype=jnp.bfloat16):
    E = p["q_w"].shape[0]
    Dh = E // num_heads
    scale = 1.0 / math.sqrt(Dh)
    wq, wk, wv = jnp.split(p["in_proj_w"], 3, axis=0)   # each (E, E)
    bq, bk, bv = jnp.split(p["in_proj_b"], 3, axis=0)   # each (E,)
    w_in = jnp.concatenate([
        (wq @ p["q_w"]).T * scale,
        (wk @ p["k_w"]).T,
        (wv @ p["v_w"]).T,
    ], axis=1)                                          # (D, 3E)
    b_in = jnp.concatenate([
        (wq @ p["q_b"] + bq) * scale,
        wk @ p["k_b"] + bk,
        wv @ p["v_b"] + bv,
    ], axis=0)                                          # (3E,)
    return dict(
        w_in=w_in.astype(compute_dtype),
        b_in=b_in.astype(jnp.float32),
        w_out=p["out_w"].T.astype(compute_dtype),       # (E, E)
        b_out=p["out_b"].astype(jnp.float32),
    )


# --------------------------------------------------------------------------
# Forward pass: one fused in-projection kernel + one attention(+out-proj) kernel.
# --------------------------------------------------------------------------
def self_attention_forward(x, fp, num_heads, *, need_weights=True):
    B, S, D = x.shape
    E = fp["w_out"].shape[0]
    compute_dtype = fp["w_in"].dtype

    # Fused in-projection: (B*S, D) @ (D, 3E) -> q'|k'|v' (q' pre-scaled).
    xf = x.reshape(B * S, D).astype(compute_dtype)
    qkv = linear(xf, fp["w_in"], fp["b_in"], out_dtype=compute_dtype)   # (B*S, 3E)
    qkv = qkv.reshape(B, S, 3 * E)                                      # no split!

    # Multi-head attention with fused out-projection.
    out, attn_w = attention(qkv, fp["w_out"], fp["b_out"], num_heads,
                            need_weights=need_weights, out_dtype=jnp.float32)
    return out, attn_w                          # attn_w: (B, H, S, S) f32 or None


# --------------------------------------------------------------------------
# Pure-JAX reference (same folded bf16 params, same rounding points) for checking.
# --------------------------------------------------------------------------
def reference_forward(x, fp, num_heads):
    B, S, D = x.shape
    E = fp["w_out"].shape[0]
    Dh = E // num_heads
    cd = fp["w_in"].dtype
    f32 = jnp.float32
    xq = x.astype(cd).astype(f32).reshape(B * S, D)
    qkv = (xq @ fp["w_in"].astype(f32) + fp["b_in"]).astype(cd)   # stored in bf16
    qkv = qkv.astype(f32).reshape(B, S, 3 * E)
    q, k, v = qkv[..., :E], qkv[..., E:2 * E], qkv[..., 2 * E:]

    def split_heads(t):
        return t.reshape(B, S, num_heads, Dh).transpose(0, 2, 1, 3)

    qh, kh, vh = split_heads(q), split_heads(k), split_heads(v)
    s = jnp.einsum("bhqd,bhkd->bhqk", qh, kh)          # q already carries 1/sqrt(Dh)
    w = jax.nn.softmax(s, axis=-1)
    o = jnp.einsum("bhqk,bhkd->bhqd", w.astype(cd).astype(f32), vh)
    o = o.transpose(0, 2, 1, 3).reshape(B, S, E)
    out = o.astype(cd).astype(f32) @ fp["w_out"].astype(f32) + fp["b_out"]
    return out, w


# --------------------------------------------------------------------------
if __name__ == "__main__":
    B, S = 2, 8
    input_dim, dim_value, num_heads = 16, 32, 4      # embed dim E = 128, head_dim = 32
    E = dim_value * num_heads

    key = jax.random.PRNGKey(0)
    k_param, k_x = jax.random.split(key)
    raw_params = init_params(k_param, input_dim, dim_value, num_heads)
    folded = fold_params(raw_params, num_heads, compute_dtype=jnp.bfloat16)
    x = jax.random.normal(k_x, (B, S, input_dim), jnp.float32)

    fwd = jax.jit(functools.partial(self_attention_forward,
                                    num_heads=num_heads, need_weights=True))
    out, attn_w = fwd(x, folded)
    jax.block_until_ready((out, attn_w))

    assert out.shape == (B, S, E) and out.dtype == jnp.float32
    assert attn_w.shape == (B, num_heads, S, S)
    assert bool(jnp.all(jnp.isfinite(out))) and bool(jnp.all(jnp.isfinite(attn_w)))

    # softmax rows sum to 1 (exact division on the returned weights)
    row_sums = jnp.sum(attn_w, axis=-1)
    assert bool(jnp.all(jnp.abs(row_sums - 1.0) < 1e-3))

    # compare against pure-JAX reference (same bf16 rounding points)
    ref_out, ref_w = reference_forward(x, folded, num_heads)
    rel_err = jnp.max(jnp.abs(out - ref_out)) / (jnp.max(jnp.abs(ref_out)) + 1e-6)
    w_err = jnp.max(jnp.abs(attn_w - ref_w))
    assert bool(rel_err < 5e-2), f"output rel err {rel_err}"
    assert bool(w_err < 5e-2), f"weights abs err {w_err}"

    print("KERNEL_OK")
</pallas_src>

<mosaic_0001>
module attributes {stable_mosaic.version = 11 : i64} {
  func.func @_attn_kernel(%arg0: i32, %arg1: i32, %arg2: memref<1x8x128xbf16, #tpu.memory_space<vmem>>, %arg3: memref<1x8x128xbf16, #tpu.memory_space<vmem>>, %arg4: memref<1x8x128xbf16, #tpu.memory_space<vmem>>, %arg5: memref<128x128xbf16, #tpu.memory_space<vmem>>, %arg6: memref<1x128xf32, #tpu.memory_space<vmem>>, %arg7: memref<1x8x128xf32, #tpu.memory_space<vmem>>, %arg8: memref<1x4x8x8xf32, #tpu.memory_space<vmem>>, %arg9: memref<8x128xf32, #tpu.memory_space<vmem>>) attributes {dimension_semantics = [#tpu.dimension_semantics<parallel>, #tpu.dimension_semantics<parallel>], iteration_bounds = array<i64: 2, 1>, scalar_prefetch = 0 : i64, scratch_operands = 1 : i64, tpu.core_type = #tpu.core_type<tc>, window_params = [{transform_indices = @transform_0, window_bounds = array<i64: 1, 8, 128>}, {transform_indices = @transform_1, window_bounds = array<i64: 1, 8, 128>}, {transform_indices = @transform_2, window_bounds = array<i64: 1, 8, 128>}, {pipeline_mode = #tpu.pipeline_mode<synchronous>, transform_indices = @transform_3, window_bounds = array<i64: 128, 128>}, {pipeline_mode = #tpu.pipeline_mode<synchronous>, transform_indices = @transform_4, window_bounds = array<i64: 1, 128>}, {transform_indices = @transform_5, window_bounds = array<i64: 1, 8, 128>}, {transform_indices = @transform_6, window_bounds = array<i64: 1, 4, 8, 8>}]} {
    %c0 = arith.constant 0 : index
    %c0_0 = arith.constant 0 : index
    %c0_1 = arith.constant 0 : index
    %0 = vector.load %arg2[%c0, %c0_0, %c0_1] : memref<1x8x128xbf16, #tpu.memory_space<vmem>>, vector<1x8x32xbf16>
    %1 = vector.shape_cast %0 : vector<1x8x32xbf16> to vector<8x32xbf16>
    %c0_2 = arith.constant 0 : index
    %c0_3 = arith.constant 0 : index
    %c0_4 = arith.constant 0 : index
    %2 = vector.load %arg3[%c0_2, %c0_3, %c0_4] : memref<1x8x128xbf16, #tpu.memory_space<vmem>>, vector<1x8x32xbf16>
    %3 = vector.shape_cast %2 : vector<1x8x32xbf16> to vector<8x32xbf16>
    %c0_5 = arith.constant 0 : index
    %c0_6 = arith.constant 0 : index
    %c0_7 = arith.constant 0 : index
    %4 = vector.load %arg4[%c0_5, %c0_6, %c0_7] : memref<1x8x128xbf16, #tpu.memory_space<vmem>>, vector<1x8x32xbf16>
    %5 = vector.shape_cast %4 : vector<1x8x32xbf16> to vector<8x32xbf16>
    %cst = arith.constant dense<0.000000e+00> : vector<8x8xf32>
    %6 = tpu.matmul %1, %3, %cst {dimension_numbers = #tpu.dot_dimension_numbers<[1], [1], [0], [0], [0, 0, 1, 0], [], []>} : vector<8x32xbf16>, vector<8x32xbf16>, vector<8x8xf32> -> vector<8x8xf32>
    %cst_8 = arith.constant dense<0xFF800000> : vector<8xf32>
    %7 = vector.multi_reduction <maximumf>, %6, %cst_8 [1] : vector<8x8xf32> to vector<8xf32>
    %8 = vector.shape_cast %7 : vector<8xf32> to vector<8x1xf32>
    %9 = vector.broadcast %8 : vector<8x1xf32> to vector<8x8xf32>
    %10 = arith.subf %6, %9 : vector<8x8xf32>
    %11 = math.exp %10 : vector<8x8xf32>
    %cst_9 = arith.constant dense<0.000000e+00> : vector<8xf32>
    %12 = vector.multi_reduction <add>, %11, %cst_9 [1] : vector<8x8xf32> to vector<8xf32>
    %13 = vector.shape_cast %12 : vector<8xf32> to vector<8x1xf32>
    %14 = vector.broadcast %13 : vector<8x1xf32> to vector<8x8xf32>
    %15 = arith.divf %11, %14 : vector<8x8xf32>
    %c0_10 = arith.constant 0 : index
    %c0_11 = arith.constant 0 : index
    %c0_12 = arith.constant 0 : index
    %c0_13 = arith.constant 0 : index
    %16 = vector.load %arg8[%c0_10, %c0_11, %c0_12, %c0_13] : memref<1x4x8x8xf32, #tpu.memory_space<vmem>>, vector<1x1x8x8xf32>
    %17 = vector.shape_cast %16 : vector<1x1x8x8xf32> to vector<8x8xf32>
    %18 = vector.shape_cast %15 : vector<8x8xf32> to vector<1x1x8x8xf32>
    tpu.vector_store %arg8[%c0_10, %c0_11, %c0_12, %c0_13], %18 {strides = array<i32>} : memref<1x4x8x8xf32, #tpu.memory_space<vmem>>, vector<1x1x8x8xf32>,
    %19 = arith.truncf %15 : vector<8x8xf32> to vector<8x8xbf16>
    %cst_14 = arith.constant dense<0.000000e+00> : vector<8x32xf32>
    %20 = tpu.matmul %19, %5, %cst_14 {dimension_numbers = #tpu.dot_dimension_numbers<[1], [0], [0], [1], [0, 0, 1, 1], [], []>} : vector<8x8xbf16>, vector<8x32xbf16>, vector<8x32xf32> -> vector<8x32xf32>
    %c0_15 = arith.constant 0 : index
    %c0_16 = arith.constant 0 : index
    %21 = vector.load %arg9[%c0_15, %c0_16] : memref<8x128xf32, #tpu.memory_space<vmem>>, vector<8x32xf32>
    tpu.vector_store %arg9[%c0_15, %c0_16], %20 {strides = array<i32>} : memref<8x128xf32, #tpu.memory_space<vmem>>, vector<8x32xf32>,
    %c0_17 = arith.constant 0 : index
    %c0_18 = arith.constant 0 : index
    %c32 = arith.constant 32 : index
    %22 = vector.load %arg2[%c0_17, %c0_18, %c32] : memref<1x8x128xbf16, #tpu.memory_space<vmem>>, vector<1x8x32xbf16>
    %23 = vector.shape_cast %22 : vector<1x8x32xbf16> to vector<8x32xbf16>
    %c0_19 = arith.constant 0 : index
    %c0_20 = arith.constant 0 : index
    %c32_21 = arith.constant 32 : index
    %24 = vector.load %arg3[%c0_19, %c0_20, %c32_21] : memref<1x8x128xbf16, #tpu.memory_space<vmem>>, vector<1x8x32xbf16>
    %25 = vector.shape_cast %24 : vector<1x8x32xbf16> to vector<8x32xbf16>
    %c0_22 = arith.constant 0 : index
    %c0_23 = arith.constant 0 : index
    %c32_24 = arith.constant 32 : index
    %26 = vector.load %arg4[%c0_22, %c0_23, %c32_24] : memref<1x8x128xbf16, #tpu.memory_space<vmem>>, vector<1x8x32xbf16>
    %27 = vector.shape_cast %26 : vector<1x8x32xbf16> to vector<8x32xbf16>
    %cst_25 = arith.constant dense<0.000000e+00> : vector<8x8xf32>
    %28 = tpu.matmul %23, %25, %cst_25 {dimension_numbers = #tpu.dot_dimension_numbers<[1], [1], [0], [0], [0, 0, 1, 0], [], []>} : vector<8x32xbf16>, vector<8x32xbf16>, vector<8x8xf32> -> vector<8x8xf32>
    %cst_26 = arith.constant dense<0xFF800000> : vector<8xf32>
    %29 = vector.multi_reduction <maximumf>, %28, %cst_26 [1] : vector<8x8xf32> to vector<8xf32>
    %30 = vector.shape_cast %29 : vector<8xf32> to vector<8x1xf32>
    %31 = vector.broadcast %30 : vector<8x1xf32> to vector<8x8xf32>
    %32 = arith.subf %28, %31 : vector<8x8xf32>
    %33 = math.exp %32 : vector<8x8xf32>
    %cst_27 = arith.constant dense<0.000000e+00> : vector<8xf32>
    %34 = vector.multi_reduction <add>, %33, %cst_27 [1] : vector<8x8xf32> to vector<8xf32>
    %35 = vector.shape_cast %34 : vector<8xf32> to vector<8x1xf32>
    %36 = vector.broadcast %35 : vector<8x1xf32> to vector<8x8xf32>
    %37 = arith.divf %33, %36 : vector<8x8xf32>
    %c0_28 = arith.constant 0 : index
    %c1 = arith.constant 1 : index
    %c0_29 = arith.constant 0 : index
    %c0_30 = arith.constant 0 : index
    %38 = vector.load %arg8[%c0_28, %c1, %c0_29, %c0_30] : memref<1x4x8x8xf32, #tpu.memory_space<vmem>>, vector<1x1x8x8xf32>
    %39 = vector.shape_cast %38 : vector<1x1x8x8xf32> to vector<8x8xf32>
    %40 = vector.shape_cast %37 : vector<8x8xf32> to vector<1x1x8x8xf32>
    tpu.vector_store %arg8[%c0_28, %c1, %c0_29, %c0_30], %40 {strides = array<i32>} : memref<1x4x8x8xf32, #tpu.memory_space<vmem>>, vector<1x1x8x8xf32>,
    %41 = arith.truncf %37 : vector<8x8xf32> to vector<8x8xbf16>
    %cst_31 = arith.constant dense<0.000000e+00> : vector<8x32xf32>
    %42 = tpu.matmul %41, %27, %cst_31 {dimension_numbers = #tpu.dot_dimension_numbers<[1], [0], [0], [1], [0, 0, 1, 1], [], []>} : vector<8x8xbf16>, vector<8x32xbf16>, vector<8x32xf32> -> vector<8x32xf32>
    %c0_32 = arith.constant 0 : index
    %c32_33 = arith.constant 32 : index
    %43 = vector.load %arg9[%c0_32, %c32_33] : memref<8x128xf32, #tpu.memory_space<vmem>>, vector<8x32xf32>
    tpu.vector_store %arg9[%c0_32, %c32_33], %42 {strides = array<i32>} : memref<8x128xf32, #tpu.memory_space<vmem>>, vector<8x32xf32>,
    %c0_34 = arith.constant 0 : index
    %c0_35 = arith.constant 0 : index
    %c64 = arith.constant 64 : index
    %44 = vector.load %arg2[%c0_34, %c0_35, %c64] : memref<1x8x128xbf16, #tpu.memory_space<vmem>>, vector<1x8x32xbf16>
    %45 = vector.shape_cast %44 : vector<1x8x32xbf16> to vector<8x32xbf16>
    %c0_36 = arith.constant 0 : index
    %c0_37 = arith.constant 0 : index
    %c64_38 = arith.constant 64 : index
    %46 = vector.load %arg3[%c0_36, %c0_37, %c64_38] : memref<1x8x128xbf16, #tpu.memory_space<vmem>>, vector<1x8x32xbf16>
    %47 = vector.shape_cast %46 : vector<1x8x32xbf16> to vector<8x32xbf16>
    %c0_39 = arith.constant 0 : index
    %c0_40 = arith.constant 0 : index
    %c64_41 = arith.constant 64 : index
    %48 = vector.load %arg4[%c0_39, %c0_40, %c64_41] : memref<1x8x128xbf16, #tpu.memory_space<vmem>>, vector<1x8x32xbf16>
    %49 = vector.shape_cast %48 : vector<1x8x32xbf16> to vector<8x32xbf16>
    %cst_42 = arith.constant dense<0.000000e+00> : vector<8x8xf32>
    %50 = tpu.matmul %45, %47, %cst_42 {dimension_numbers = #tpu.dot_dimension_numbers<[1], [1], [0], [0], [0, 0, 1, 0], [], []>} : vector<8x32xbf16>, vector<8x32xbf16>, vector<8x8xf32> -> vector<8x8xf32>
    %cst_43 = arith.constant dense<0xFF800000> : vector<8xf32>
    %51 = vector.multi_reduction <maximumf>, %50, %cst_43 [1] : vector<8x8xf32> to vector<8xf32>
    %52 = vector.shape_cast %51 : vector<8xf32> to vector<8x1xf32>
    %53 = vector.broadcast %52 : vector<8x1xf32> to vector<8x8xf32>
    %54 = arith.subf %50, %53 : vector<8x8xf32>
    %55 = math.exp %54 : vector<8x8xf32>
    %cst_44 = arith.constant dense<0.000000e+00> : vector<8xf32>
    %56 = vector.multi_reduction <add>, %55, %cst_44 [1] : vector<8x8xf32> to vector<8xf32>
    %57 = vector.shape_cast %56 : vector<8xf32> to vector<8x1xf32>
    %58 = vector.broadcast %57 : vector<8x1xf32> to vector<8x8xf32>
    %59 = arith.divf %55, %58 : vector<8x8xf32>
    %c0_45 = arith.constant 0 : index
    %c2 = arith.constant 2 : index
    %c0_46 = arith.constant 0 : index
    %c0_47 = arith.constant 0 : index
    %60 = vector.load %arg8[%c0_45, %c2, %c0_46, %c0_47] : memref<1x4x8x8xf32, #tpu.memory_space<vmem>>, vector<1x1x8x8xf32>
    %61 = vector.shape_cast %60 : vector<1x1x8x8xf32> to vector<8x8xf32>
    %62 = vector.shape_cast %59 : vector<8x8xf32> to vector<1x1x8x8xf32>
    tpu.vector_store %arg8[%c0_45, %c2, %c0_46, %c0_47], %62 {strides = array<i32>} : memref<1x4x8x8xf32, #tpu.memory_space<vmem>>, vector<1x1x8x8xf32>,
    %63 = arith.truncf %59 : vector<8x8xf32> to vector<8x8xbf16>
    %cst_48 = arith.constant dense<0.000000e+00> : vector<8x32xf32>
    %64 = tpu.matmul %63, %49, %cst_48 {dimension_numbers = #tpu.dot_dimension_numbers<[1], [0], [0], [1], [0, 0, 1, 1], [], []>} : vector<8x8xbf16>, vector<8x32xbf16>, vector<8x32xf32> -> vector<8x32xf32>
    %c0_49 = arith.constant 0 : index
    %c64_50 = arith.constant 64 : index
    %65 = vector.load %arg9[%c0_49, %c64_50] : memref<8x128xf32, #tpu.memory_space<vmem>>, vector<8x32xf32>
    tpu.vector_store %arg9[%c0_49, %c64_50], %64 {strides = array<i32>} : memref<8x128xf32, #tpu.memory_space<vmem>>, vector<8x32xf32>,
    %c0_51 = arith.constant 0 : index
    %c0_52 = arith.constant 0 : index
    %c96 = arith.constant 96 : index
    %66 = vector.load %arg2[%c0_51, %c0_52, %c96] : memref<1x8x128xbf16, #tpu.memory_space<vmem>>, vector<1x8x32xbf16>
    %67 = vector.shape_cast %66 : vector<1x8x32xbf16> to vector<8x32xbf16>
    %c0_53 = arith.constant 0 : index
    %c0_54 = arith.constant 0 : index
    %c96_55 = arith.constant 96 : index
    %68 = vector.load %arg3[%c0_53, %c0_54, %c96_55] : memref<1x8x128xbf16, #tpu.memory_space<vmem>>, vector<1x8x32xbf16>
    %69 = vector.shape_cast %68 : vector<1x8x32xbf16> to vector<8x32xbf16>
    %c0_56 = arith.constant 0 : index
    %c0_57 = arith.constant 0 : index
    %c96_58 = arith.constant 96 : index
    %70 = vector.load %arg4[%c0_56, %c0_57, %c96_58] : memref<1x8x128xbf16, #tpu.memory_space<vmem>>, vector<1x8x32xbf16>
    %71 = vector.shape_cast %70 : vector<1x8x32xbf16> to vector<8x32xbf16>
    %cst_59 = arith.constant dense<0.000000e+00> : vector<8x8xf32>
    %72 = tpu.matmul %67, %69, %cst_59 {dimension_numbers = #tpu.dot_dimension_numbers<[1], [1], [0], [0], [0, 0, 1, 0], [], []>} : vector<8x32xbf16>, vector<8x32xbf16>, vector<8x8xf32> -> vector<8x8xf32>
    %cst_60 = arith.constant dense<0xFF800000> : vector<8xf32>
    %73 = vector.multi_reduction <maximumf>, %72, %cst_60 [1] : vector<8x8xf32> to vector<8xf32>
    %74 = vector.shape_cast %73 : vector<8xf32> to vector<8x1xf32>
    %75 = vector.broadcast %74 : vector<8x1xf32> to vector<8x8xf32>
    %76 = arith.subf %72, %75 : vector<8x8xf32>
    %77 = math.exp %76 : vector<8x8xf32>
    %cst_61 = arith.constant dense<0.000000e+00> : vector<8xf32>
    %78 = vector.multi_reduction <add>, %77, %cst_61 [1] : vector<8x8xf32> to vector<8xf32>
    %79 = vector.shape_cast %78 : vector<8xf32> to vector<8x1xf32>
    %80 = vector.broadcast %79 : vector<8x1xf32> to vector<8x8xf32>
    %81 = arith.divf %77, %80 : vector<8x8xf32>
    %c0_62 = arith.constant 0 : index
    %c3 = arith.constant 3 : index
    %c0_63 = arith.constant 0 : index
    %c0_64 = arith.constant 0 : index
    %82 = vector.load %arg8[%c0_62, %c3, %c0_63, %c0_64] : memref<1x4x8x8xf32, #tpu.memory_space<vmem>>, vector<1x1x8x8xf32>
    %83 = vector.shape_cast %82 : vector<1x1x8x8xf32> to vector<8x8xf32>
    %84 = vector.shape_cast %81 : vector<8x8xf32> to vector<1x1x8x8xf32>
    tpu.vector_store %arg8[%c0_62, %c3, %c0_63, %c0_64], %84 {strides = array<i32>} : memref<1x4x8x8xf32, #tpu.memory_space<vmem>>, vector<1x1x8x8xf32>,
    %85 = arith.truncf %81 : vector<8x8xf32> to vector<8x8xbf16>
    %cst_65 = arith.constant dense<0.000000e+00> : vector<8x32xf32>
    %86 = tpu.matmul %85, %71, %cst_65 {dimension_numbers = #tpu.dot_dimension_numbers<[1], [0], [0], [1], [0, 0, 1, 1], [], []>} : vector<8x8xbf16>, vector<8x32xbf16>, vector<8x32xf32> -> vector<8x32xf32>
    %c0_66 = arith.constant 0 : index
    %c96_67 = arith.constant 96 : index
    %87 = vector.load %arg9[%c0_66, %c96_67] : memref<8x128xf32, #tpu.memory_space<vmem>>, vector<8x32xf32>
    tpu.vector_store %arg9[%c0_66, %c96_67], %86 {strides = array<i32>} : memref<8x128xf32, #tpu.memory_space<vmem>>, vector<8x32xf32>,
    %c0_68 = arith.constant 0 : index
    %c0_69 = arith.constant 0 : index
    %88 = vector.load %arg9[%c0_68, %c0_69] : memref<8x128xf32, #tpu.memory_space<vmem>>, vector<8x128xf32>
    %89 = arith.truncf %88 : vector<8x128xf32> to vector<8x128xbf16>
    %c0_70 = arith.constant 0 : index
    %c0_71 = arith.constant 0 : index
    %90 = vector.load %arg5[%c0_70, %c0_71] : memref<128x128xbf16, #tpu.memory_space<vmem>>, vector<128x128xbf16>
    %cst_72 = arith.constant dense<0.000000e+00> : vector<8x128xf32>
    %91 = tpu.matmul %89, %90, %cst_72 {dimension_numbers = #tpu.dot_dimension_numbers<[1], [0], [0], [1], [0, 0, 1, 1], [], []>} : vector<8x128xbf16>, vector<128x128xbf16>, vector<8x128xf32> -> vector<8x128xf32>
    %c0_73 = arith.constant 0 : index
    %c0_74 = arith.constant 0 : index
    %92 = vector.load %arg6[%c0_73, %c0_74] : memref<1x128xf32, #tpu.memory_space<vmem>>, vector<1x128xf32>
    %93 = vector.broadcast %92 : vector<1x128xf32> to vector<8x128xf32>
    %94 = arith.addf %91, %93 : vector<8x128xf32>
    %c0_75 = arith.constant 0 : index
    %c0_76 = arith.constant 0 : index
    %c0_77 = arith.constant 0 : index
    %95 = vector.load %arg7[%c0_75, %c0_76, %c0_77] : memref<1x8x128xf32, #tpu.memory_space<vmem>>, vector<1x8x128xf32>
    %96 = vector.shape_cast %95 : vector<1x8x128xf32> to vector<8x128xf32>
    %97 = vector.shape_cast %94 : vector<8x128xf32> to vector<1x8x128xf32>
    tpu.vector_store %arg7[%c0_75, %c0_76, %c0_77], %97 {strides = array<i32>} : memref<1x8x128xf32, #tpu.memory_space<vmem>>, vector<1x8x128xf32>,
    return
  }
  func.func @transform_0(%arg0: i32, %arg1: i32) -> (i32, i32, i32) {
    %c0_i32 = arith.constant 0 : i32
    %c0_i32_0 = arith.constant 0 : i32
    return %arg0, %arg1, %c0_i32 : i32, i32, i32
  }
  func.func @transform_1(%arg0: i32, %arg1: i32) -> (i32, i32, i32) {
    %c0_i32 = arith.constant 0 : i32
    %c1_i32 = arith.constant 1 : i32
    %c0_i32_0 = arith.constant 0 : i32
    return %arg0, %c0_i32, %c1_i32 : i32, i32, i32
  }
  func.func @transform_2(%arg0: i32, %arg1: i32) -> (i32, i32, i32) {
    %c0_i32 = arith.constant 0 : i32
    %c2_i32 = arith.constant 2 : i32
    %c0_i32_0 = arith.constant 0 : i32
    return %arg0, %c0_i32, %c2_i32 : i32, i32, i32
  }
  func.func @transform_3(%arg0: i32, %arg1: i32) -> (i32, i32) {
    %c0_i32 = arith.constant 0 : i32
    %c0_i32_0 = arith.constant 0 : i32
    %c0_i32_1 = arith.constant 0 : i32
    return %c0_i32, %c0_i32_0 : i32, i32
  }
  func.func @transform_4(%arg0: i32, %arg1: i32) -> (i32, i32) {
    %c0_i32 = arith.constant 0 : i32
    %c0_i32_0 = arith.constant 0 : i32
    %c0_i32_1 = arith.constant 0 : i32
    return %c0_i32, %c0_i32_0 : i32, i32
  }
  func.func @transform_5(%arg0: i32, %arg1: i32) -> (i32, i32, i32) {
    %c0_i32 = arith.constant 0 : i32
    %c0_i32_0 = arith.constant 0 : i32
    return %arg0, %arg1, %c0_i32 : i32, i32, i32
  }
  func.func @transform_6(%arg0: i32, %arg1: i32) -> (i32, i32, i32, i32) {
    %c0_i32 = arith.constant 0 : i32
    %c0_i32_0 = arith.constant 0 : i32
    %c0_i32_1 = arith.constant 0 : i32
    return %arg0, %c0_i32, %arg1, %c0_i32_0 : i32, i32, i32, i32
  }
}

module attributes {stable_mosaic.version = 11 : i64} {
  func.func @_linear_kernel(%arg0: i32, %arg1: i32, %arg2: memref<8x16xbf16, #tpu.memory_space<vmem>>, %arg3: memref<16x384xbf16, #tpu.memory_space<vmem>>, %arg4: memref<1x384xf32, #tpu.memory_space<vmem>>, %arg5: memref<8x384xbf16, #tpu.memory_space<vmem>>) attributes {dimension_semantics = [#tpu.dimension_semantics<parallel>, #tpu.dimension_semantics<parallel>], iteration_bounds = array<i64: 2, 1>, scalar_prefetch = 0 : i64, scratch_operands = 0 : i64, tpu.core_type = #tpu.core_type<tc>, window_params = [{transform_indices = @transform_0, window_bounds = array<i64: 8, 16>}, {transform_indices = @transform_1, window_bounds = array<i64: 16, 384>}, {transform_indices = @transform_2, window_bounds = array<i64: 1, 384>}, {transform_indices = @transform_3, window_bounds = array<i64: 8, 384>}]} {
    %c0 = arith.constant 0 : index
    %c0_0 = arith.constant 0 : index
    %0 = vector.load %arg2[%c0, %c0_0] : memref<8x16xbf16, #tpu.memory_space<vmem>>, vector<8x16xbf16>
    %c0_1 = arith.constant 0 : index
    %c0_2 = arith.constant 0 : index
    %1 = vector.load %arg3[%c0_1, %c0_2] : memref<16x384xbf16, #tpu.memory_space<vmem>>, vector<16x384xbf16>
    %cst = arith.constant dense<0.000000e+00> : vector<8x384xf32>
    %2 = tpu.matmul %0, %1, %cst {dimension_numbers = #tpu.dot_dimension_numbers<[1], [0], [0], [1], [0, 0, 1, 1], [], []>} : vector<8x16xbf16>, vector<16x384xbf16>, vector<8x384xf32> -> vector<8x384xf32>
    %c0_3 = arith.constant 0 : index
    %c0_4 = arith.constant 0 : index
    %3 = vector.load %arg4[%c0_3, %c0_4] : memref<1x384xf32, #tpu.memory_space<vmem>>, vector<1x384xf32>
    %4 = vector.broadcast %3 : vector<1x384xf32> to vector<8x384xf32>
    %5 = arith.addf %2, %4 : vector<8x384xf32>
    %6 = arith.truncf %5 : vector<8x384xf32> to vector<8x384xbf16>
    %c0_5 = arith.constant 0 : index
    %c0_6 = arith.constant 0 : index
    %7 = vector.load %arg5[%c0_5, %c0_6] : memref<8x384xbf16, #tpu.memory_space<vmem>>, vector<8x384xbf16>
    tpu.vector_store %arg5[%c0_5, %c0_6], %6 {strides = array<i32>} : memref<8x384xbf16, #tpu.memory_space<vmem>>, vector<8x384xbf16>,
    return
  }
  func.func @transform_0(%arg0: i32, %arg1: i32) -> (i32, i32) {
    %c0_i32 = arith.constant 0 : i32
    %c0_i32_0 = arith.constant 0 : i32
    return %arg0, %c0_i32 : i32, i32
  }
  func.func @transform_1(%arg0: i32, %arg1: i32) -> (i32, i32) {
    %c0_i32 = arith.constant 0 : i32
    %c0_i32_0 = arith.constant 0 : i32
    return %c0_i32, %arg1 : i32, i32
  }
  func.func @transform_2(%arg0: i32, %arg1: i32) -> (i32, i32) {
    %c0_i32 = arith.constant 0 : i32
    %c0_i32_0 = arith.constant 0 : i32
    return %c0_i32, %arg1 : i32, i32
  }
  func.func @transform_3(%arg0: i32, %arg1: i32) -> (i32, i32) {
    %c0_i32 = arith.constant 0 : i32
    return %arg0, %arg1 : i32, i32
  }
}

</mosaic_0001>

<bundles_post_ra>
// kernel: self_attention_forward.2
= control target key start
LH: loop header
LB: loop body
LE: loop exit
PB: predicated region body
PF: predicated region fallthrough
CT: control target
= control target key end

     0   :  { %8 = vsyncpa [#allocation3], 0  ;;  %s636_s12 = smov 0   ;;  %s638_s13 = smov 0   ;;  %s715_s0 = inlined_call_operand.vmem [shape: bf16[16,16], index: 0, kind: input, shape index: {}]   ;;  %s716_s1 = inlined_call_operand.hbm [shape: bf16[16,384], index: 1, kind: input, shape index: {}]   ;;  %s717_s2 = inlined_call_operand.vmem [shape: f32[1,384], index: 2, kind: input, shape index: {}]   ;;  %s718_s3 = inlined_call_operand.vmem [shape: bf16[16,384], index: 3, kind: output, shape index: {}]  }
   0x1   :  { %s640_s14 = smov 0  }
   0x2 LB: > { %s480_s15 = sadd.s32 4294967295, %s608_s14   ;;  %s26_s16 = sadd.s32 1, %s604_s13  ;;  %s608_s14 = sphi %s640_s14, %s14_s14   ;;  %s604_s13 = sphi %s638_s13, %s728_s13   ;;  %s600_s12 = sphi %s636_s12, %s727_s12  }
   0x3   : > { %p28_p0 = scmp.ge.s32.totalorder %s26_s16, 2  ;;  %p482_p1 = scmp.ge.s32.totalorder %s608_s14, 1 }
   0x4   : > { %p137_p2 = scmp.lt.s32.totalorder %s608_s14, 3  ;;  %p661_p4 = scmp.eq.s32.totalorder %s480_s15, 0 }
   0x5   : > { %s730_s16 = smov (%p28_p0, %s26_s16), 0  ;;  %s610_s19 = smov [#allocation2]  }
   0x6   : > { %p657_p3 = pnand %p482_p1, %p137_p2  ;;  %s152_s20 = sshll.u32 %s610_s19, 4  ;;  %s153_s20 = int_to_ptr.vmem [resolvable:$true] %s152_s20 }
   0x7   : > { %s723_s18 = scalar_select %p661_p4, 1, 0 }
   0x8   : > { %s722_s17 = scalar_select %p657_p3, 1, 0 }
   0x9   : > { %p514_p5 = pneg %p657_p3  ;;  %s554_s24 = scalar_lea.hbm %s716_s1, 384 }
   0xa   : > { %p555_p7 = scmp.ne.s32.totalorder %s716_s1, %s554_s24  ;;  %p561_p11 = scmp.lt.u32.totalorder %s554_s24, %s716_s1 }
   0xb   : > { %p669_p6 = pnand %p661_p4, %p514_p5 }
   0xd   : > { %p556_p8 = pneg %p669_p6 }
   0xf   : > { %p557_p9 = pnand %p556_p8, %p555_p7 }
  0x11   : > { %p558_p10 = pneg %p557_p9 }
  0x13   : > { %p563_p12 = pnand %p561_p11, %p558_p10 }
  0x15   : > { %566 = shalt.err (!%p563_p12)
}
  0x16   : > { %s567_s29 = scalar_lea.vmem %s153_s20, 384  ;;  %p575_p2 = scmp.lt.s32.totalorder %s153_s20, %s153_s20 }
  0x17   : > { %p568_p13 = scmp.ne.s32.totalorder %s153_s20, %s567_s29  ;;  %p576_p5 = scmp.lt.s32.totalorder %s567_s29, %s567_s29 }
  0x19   : > { %p570_p0 = pnand %p568_p13, %p556_p8  ;;  %p577_p4 = por %p576_p5, %p575_p2 }
  0x1b   : > { %p571_p1 = pneg %p570_p0 }
  0x1d   : > { %p578_p3 = pnand %p577_p4, %p571_p1 }
  0x1f   : > { %581 = shalt.err (!%p578_p3)
}
  0x20   : > { %s611_s30 = smov 192   ;;  %s612_s4 = smov 12  }
  0x21   : > { %517 = dma.hbm_to_vmem [thread:$0]  (!%p669_p6), %s716_s1, 384, %s153_s20, [#allocation3], %s611_s30, %s611_s30, %s612_s4  }
  0x22   : > { %p725_p7 = scmp.ne.s32.totalorder %s722_s17, 0 }
  0x23   : > { %p726_p9 = scmp.ne.s32.totalorder (!%p725_p7), %s723_s18, 0 }
  0x24   : > { %183 = sbr.rel (%p725_p7) target bundleno = 268 (0x10c), region = 32 }
  0x2b   : > { %595 = dma.done.wait (%p726_p9), [#allocation3], 384  }
  0x2c   : > { %597 = vsyncadd (%p726_p9), [#allocation3], 4294966912  ;;  %p214_p3 = scmp.lt.s32.totalorder %s600_s12, 1  ;;  %v613_v0 = vmov 0.0   ;;  %vm614_vm0 = vmmov 0   ;;  %v615_v1 = vmov 0   ;;  %v242_v6 = vlaneseq }
  0x2d   : > { %503 = vmatprep.subr.bf16.mxu1 %v613_v0  ;;  %505 = vmatprep.mubr.msk.bf16.mxu1 %vm614_vm0, %v613_v0  ;;  %v550_v2 = vld [vmem:[#allocation2 + $0x4] ss:$12 sps:$4 sm:$0xff]   ;;  %v552_v3 = vld [vmem:[#allocation2 + $0x8] ss:$12 sps:$4 sm:$0xff]   ;;  %v553_v4 = vld [vmem:[#allocation2] ss:$12 sps:$4 sm:$0xff]  }
  0x2e   : > { %309 = vmatprep.mubr.bf16.mxu0 %v615_v1  ;;  %s732_s12 = smov (!%p214_p3, %s600_s12), 1  ;;  %277 = vmatprep.subr.bf16.mxu0 %v550_v2  ;;  %vm273_vm1 = vcmask 130048   ;;  %v243_v7 = vshrl.u32 %v242_v6, 7  ;;  %v240_v9 = vld [vmem:[%s717_s2] sm:$0x7] }
  0x2f   : > { %s488_s7 = sshll.u32 %s732_s12, 2  ;;  %504 = vmatpush3.bf16.msra.mxu1 %v552_v3  ;;  %278 = vmatpush1.bf16.msra.mxu0 %v553_v4  ;;  %s509_s17 = smul.u32 12, %s732_s12 }
  0x30   : > { %s217_s10 = scalar_lea.vmem %s715_s0, %s488_s7  ;;  %v252_v8 = vsub.s32 2, %v243_v7  ;;  %v244_v10 = vsub.s32 0, %v243_v7  ;;  %v248_v11 = vsub.s32 1, %v243_v7 }
  0x31   : > { %v235_v5 = vld [vmem:[%s217_s10] sm:$0xf]  ;;  %s232_s20 = scalar_lea.vmem %s718_s3, %s509_s17 }
  0x32   : > { %506 = vmatmul.mubr.msk.bf16.vlgmr.msra.gmra.mrb[0].mxu1 %vm273_vm1, %v235_v5  ;;  %493 = vmatmul.mubr.msk.bf16.vlgmr.msra.gmra.mrb[0].mxu0 %vm273_vm1, %v235_v5  ;;  %v253_v12 = vrot.slane %v240_v9, %v252_v8  ;;  %v245_v13 = vrot.slane %v240_v9, %v244_v10  ;;  %v249_v14 = vrot.slane %v240_v9, %v248_v11 }
 0x105   : > { %v352_v15 = vpop.f32.mrb[0].mxu1  ;;  %v311_v17 = vpop.f32.mrb[0].mxu0 }
 0x106   : > { %v353_v16 = vadd.f32 %v352_v15, %v253_v12  ;;  %v507_v18 = vpop.f32.mrb[1].mxu1  ;;  %v312_v19 = vadd.f32 %v311_v17, %v245_v13  ;;  %v313_v20 = vpop.f32.mrb[1].mxu0 }
 0x107   : > { %v355_v21 = vpop.f32.mrb[2].mxu1  ;;  %v314_v23 = vadd.f32 %v313_v20, %v249_v14  ;;  %v315_v24 = vpop.f32.mrb[2].mxu0 }
 0x108   : > { %v500_v22 = vpack.c.bf16 %v353_v16, %v353_v16  ;;  %v508_v25 = vpop.f32.mrb[3].mxu1  ;;  %v316_v26 = vpop.f32.mrb[3].mxu0 }
 0x109   : > { %v499_v27 = vpack.c.bf16 %v314_v23, %v312_v19 }
 0x10a   : > { %372 = vst [vmem:[%s232_s20 + $0x8] sm:$0xf] %v500_v22 }
 0x10b   : > { %371 = vst [vmem:[%s232_s20] sm:$0xff] %v499_v27 }
 0x10c PF: > { %s14_s14 = sadd.s32 1, %s608_s14   ;;  %s727_s12 = smov %s604_s13 }
 0x10d   : > { %p11_p4 = scmp.ge.s32.totalorder %s14_s14, 4   ;;  %s728_s13 = smov %s730_s16 }
 0x10f   :  { %13 = sbr.rel (!%p11_p4) target bundleno = 2 (0x2), region = 71 }
 0x116   :  { %403 = vsyncpa [#allocation3], 1 }
 0x117   :  { %405 = vsyncpa [#allocation3 + $0x1], 1 }

// kernel: self_attention_forward.3
= control target key start
LH: loop header
LB: loop body
LE: loop exit
PB: predicated region body
PF: predicated region fallthrough
CT: control target
= control target key end

     0   :  { %s1824_s0 = inlined_call_operand.vmem [shape: bf16[2,8,384], index: 0, kind: input, shape index: {}, may-alias: {0,1,2}]   ;;  %s1825_s1 = inlined_call_operand.vmem [shape: bf16[2,8,384], index: 1, kind: input, shape index: {}, may-alias: {0,1,2}]   ;;  %s1826_s2 = inlined_call_operand.vmem [shape: bf16[2,8,384], index: 2, kind: input, shape index: {}, may-alias: {0,1,2}]   ;;  %s1827_s3 = inlined_call_operand.vmem [shape: bf16[128,128], index: 3, kind: input, shape index: {}]   ;;  %s1828_s4 = inlined_call_operand.vmem [shape: f32[1,128], index: 4, kind: input, shape index: {}]   ;;  %s1829_s5 = inlined_call_operand.hbm [shape: f32[2,8,128], index: 5, kind: output, shape index: {0}]   ;;  %s1830_s6 = inlined_call_operand.hbm [shape: f32[2,4,8,8], index: 6, kind: output, shape index: {1}]  }
   0x1   :  { %1831 = sst [smem:[#allocation9_spill]] %s1824_s0 }
   0x2   :  { %12 = vsyncpa [#allocation4], 0 }
   0x3   :  { %14 = vsyncpa [#allocation4 + $0x1], 0 }
   0x4   :  { %15 = vsyncpa [#allocation6], 0 }
   0x5   :  { %17 = vsyncpa [#allocation6 + $0x1], 0  ;;  %s1543_s21 = smov 0   ;;  %s1545_s22 = smov 0  }
   0x6   :  { %s1547_s23 = smov 0   ;;  %s1549_s24 = smov 0  }
   0x7   :  { %s1551_s25 = smov 0   ;;  %s1553_s26 = smov 0  }
   0x8 LB: > { %s1138_s27 = sadd.s32 4294967295, %s1497_s26   ;;  %s1139_s28 = sadd.s32 4294967294, %s1497_s26   ;;  %s1497_s26 = sphi %s1553_s26, %s23_s26   ;;  %s1493_s25 = sphi %s1551_s25, %s1839_s25   ;;  %s1489_s24 = sphi %s1549_s24, %s1838_s24   ;;  %s1485_s23 = sphi %s1547_s23, %s1837_s23   ;;  %s1481_s22 = sphi %s1545_s22, %s1836_s22   ;;  %s1477_s21 = sphi %s1543_s21, %s1835_s21  }
   0x9   : > { %s35_s29 = sadd.s32 1, %s1493_s25  ;;  %s166_s30 = sadd.s32 1, %s1485_s23 }
   0xa   : > { %p37_p0 = scmp.ge.s32.totalorder %s35_s29, 2  ;;  %p176_p1 = scmp.ne.s32.totalorder %s1485_s23, %s1481_s22 }
   0xb   : > { %p177_p2 = scmp.eq.s32.totalorder %s1138_s27, 1  ;;  %p182_p3 = scmp.ne.s32.totalorder %s1481_s22, %s1477_s21 }
   0xc   : > { %s1841_s29 = smov (%p37_p0, %s35_s29), 0  ;;  %p183_p5 = scmp.eq.s32.totalorder %s1139_s28, 1 }
   0xd   : > { %p1583_p4 = por %p177_p2, %p176_p1  ;;  %s161_s8 = ssub.s32 %s1493_s25, %s1841_s29 }
   0xe   : > { %p1142_p6 = scmp.ge.s32.totalorder %s1497_s26, 1  ;;  %p164_p7 = scmp.eq.s32.totalorder %s161_s8, 0 }
   0xf   : > { %p1590_p8 = por %p183_p5, %p182_p3  ;;  %p265_p9 = scmp.lt.s32.totalorder %s1497_s26, 3 }
  0x10   : > { %s1596_s10 = scalar_select %p164_p7, %s1485_s23, %s166_s30  }
  0x11   : > { %p266_p10 = pnand %p1142_p6, %p265_p9 }
  0x12   : > { %p316_p11 = scmp.lt.s32.totalorder (!%p266_p10), %s1489_s24, 1  ;;  %v1499_v0 = vmov (!%p266_p10), 0.0   ;;  %vm1500_vm0 = vmmov (!%p266_p10), 0   ;;  %vm341_vm1 = vcmask (!%p266_p10), 261120   ;;  %s1834_s0 = sld [smem:[#allocation9_spill]] (!%p266_p10)  ;;  %vm388_vm2 = vcmask (!%p266_p10), 64512  }
  0x13   : > { %269 = sbr.rel (%p266_p10) target bundleno = 1693 (0x69d), region = 40  ;;  %1218 = vmatprep.subr.bf16.mxu0 (!%p266_p10), %v1499_v0  ;;  %1220 = vmatprep.mubr.msk.bf16.mxu0 (!%p266_p10), %vm1500_vm0, %v1499_v0  ;;  %s1501_s19 = smov (!%p266_p10), 96   ;;  %vm405_vm3 = vcmask (!%p266_p10), 1043456   ;;  %vm578_vm4 = vcmask (!%p266_p10), 523520   ;;  %vm708_vm5 = vcmask (!%p266_p10), 785920   ;;  %vm838_vm6 = vcmask (!%p266_p10), 1048320  }
  0x14   : > { %1242 = vmatprep.subr.bf16.mxu1 (!%p266_p10), %v1499_v0  ;;  %1244 = vmatprep.mubr.msk.bf16.mxu1 (!%p266_p10), %vm1500_vm0, %v1499_v0  ;;  %s1502_s20 = smov (!%p266_p10), 64   ;;  %s1503_s27 = smov (!%p266_p10), 32  }
  0x15   : > { %s1504_s16 = smov (!%p266_p10), [#allocation5]  }
  0x16   : > { %s1391_s17 = sshll.u32 (!%p266_p10), %s1504_s16, 4  ;;  %s1392_s17 = int_to_ptr.vmem [resolvable:$false] %s1391_s17 }
  0x1a   : > { %s317_s11 = scalar_select %p316_p11, %s1489_s24, 1 }
  0x1c   : > { %s1606_s12 = smul.u32 12, %s317_s11  ;;  %s1646_s11 = sand.u32 1, %s1481_s22  }
  0x1d   : > { %s960_s14 = scalar_lea.sflag [#allocation6], %s1646_s11 }
  0x1e   : > { %s1612_s15 = scalar_lea.vmem %s1825_s1, %s1606_s12  ;;  %s324_s18 = scalar_lea.vmem %s1834_s0, %s1606_s12 }
  0x1f   : > { %v1148_v1 = vld [vmem:[%s1612_s15 + $0x4] sm:$0xf]  ;;  %v338_v3 = vld [vmem:[%s324_s18] sm:$0xf]  ;;  %s1638_s8 = scalar_lea.vmem %s1826_s2, %s1606_s12  ;;  %s1144_s12 = sshll.u32 %s1646_s11, 5 }
  0x20   : > { %v346_v2 = vsel %vm341_vm1, %v1148_v1, 0  ;;  %v1354_v9 = vld [vmem:[%s1612_s15 + $0x4] ss:$0 sps:$4 sm:$0xff]   ;;  %v1356_v10 = vld [vmem:[%s324_s18] ss:$0 sps:$4 sm:$0xff]   ;;  %s1654_s13 = scalar_lea.vmem [#allocation5], %s1144_s12 }
  0x21   : > { %1219 = vmatpush3.bf16.xpose.msra.mxu0 %v346_v2  ;;  %461 = vrot.lane.b32.xlu1 %v1354_v9, %s1501_s19  ;;  %v1357_v11 = vld [vmem:[%s324_s18] ss:$0 sps:$4 sm:$0xff]   ;;  %v1358_v12 = vld [vmem:[%s1612_s15 + $0x4] ss:$0 sps:$4 sm:$0xff]   ;;  %v1149_v20 = vld [vmem:[%s1638_s8 + $0x8] sm:$0xf] }
  0x22   : > { %1224 = vmatprep.subr.bf16.mxu0 %v1499_v0  ;;  %v1359_v13 = vld [vmem:[%s324_s18] ss:$0 sps:$4 sm:$0xff]   ;;  %v1355_v19 = vld [vmem:[%s1612_s15 + $0x4] ss:$0 sps:$4 sm:$0xff]   ;;  %v407_v21 = vsel %vm405_vm3, %v1149_v20, 0 }
  0x25   : > { %456 = vrot.lane.b32.xlu1 %v1356_v10, %s1501_s19 }
  0x28   : > { %1221 = vmatmul.mubr.msk.bf16.vlgmr.msra.gmra.mrb[0].mxu0 %vm341_vm1, %v338_v3 }
  0x29   : > { %1226 = vmatprep.mubr.msk.bf16.mxu0 %vm1500_vm0, %v1499_v0  ;;  %586 = vrot.lane.b32.xlu1 %v1357_v11, %s1502_s20 }
  0x2a   : > { %1225 = vmatpush3.bf16.msra.mxu0 %v407_v21 }
  0x2b   : > { %1230 = vmatprep.subr.bf16.mxu0 %v1499_v0 }
  0x2d   : > { %721 = vrot.lane.b32.xlu1 %v1358_v12, %s1503_s27 }
  0x31   : > { %716 = vrot.lane.b32.xlu1 %v1359_v13, %s1503_s27 }
  0x93   : > { %v462_v22 = vpop.permute.xlu1 %461 }
  0x94   : > { %v467_v33 = vsel %vm341_vm1, %v462_v22, 0 }
  0x97   : > { %v457_v23 = vpop.permute.xlu1 %456 }
  0x9b   : > { %v587_v25 = vpop.permute.xlu1 %586 }
  0x9f   : > { %v722_v28 = vpop.permute.xlu1 %721 }
  0xa0   : > { %v727_v30 = vsel %vm341_vm1, %v722_v28, 0  ;;  %v1364_v28 = vld [vmem:[%s1827_s3 + $0x8] sm:$0xff]  }
  0xa3   : > { %v717_v34 = vpop.permute.xlu1 %716 }
  0xfb   : > { %v382_v4 = vpop.f32.mrb[0].mxu0 }
  0xfc   : > { %v1222_v5 = vpop.f32.mrb[1].mxu0  ;;  %v389_v6 = vsel %vm388_vm2, %v382_v4, -inf }
  0xfd   : > { %390 = vmax.xlane.f32.xlu0 %v389_v6  ;;  %v385_v7 = vpop.f32.mrb[2].mxu0  ;;  %v1360_v6 = vld [vmem:[%s1638_s8 + $0x8] ss:$0 sps:$4 sm:$0xff]  }
  0xfe   : > { %v1223_v8 = vpop.f32.mrb[3].mxu0  ;;  %v1361_v7 = vld [vmem:[%s1638_s8 + $0x8] ss:$0 sps:$4 sm:$0xff]  }
  0xff   : > { %v1362_v8 = vld [vmem:[%s1638_s8 + $0x8] ss:$0 sps:$4 sm:$0xff]  }
 0x18a   : > { %v391_v14 = vpop.xlane.xlu0 %390 }
 0x18b   : > { %v392_v15 = vsub.f32 %v382_v4, %v391_v14 }
 0x18d   : > { %v393_v16 = vmul.f32 1.442695, %v392_v15 }
 0x18f   : > { %1371 = vpow2.f32 %v393_v16 }
 0x199   : > { %v1372_v17 = vpop.eup %1371 }
 0x19a   : > { %v395_v18 = vsel %vm388_vm2, %v1372_v17, 0.0 }
 0x19b   : > { %396 = vadd.xlane.f32.xlu0 %v395_v18 }
 0x1b1   : > { %591 = vrot.lane.b32.xlu0 %v1355_v19, %s1502_s20 }
 0x228   : > { %v397_v24 = vpop.xlane.xlu0 %396 }
 0x229   : > { %1373 = vrcp.f32 %v397_v24 }
 0x22c   : > { %v592_v26 = vpop.permute.xlu0 %591 }
 0x22d   : > { %v597_v27 = vsel %vm341_vm1, %v592_v26, 0 }
 0x22e   : > { %1243 = vmatpush3.bf16.xpose.msra.mxu1 %v597_v27  ;;  %v1363_v27 = vld [vmem:[%s1827_s3] sm:$0xff]  }
 0x22f   : > { %1254 = vmatprep.subr.bf16.mxu1 %v1499_v0 }
 0x233   : > { %v1374_v29 = vpop.eup %1373 }
 0x234   : > { %v399_v31 = vmul.f32 %v1374_v29, %v1372_v17  ;;  %v1365_v29 = vld [vmem:[%s1827_s3 + $0x10] sm:$0xff]  }
 0x235   : > { %1245 = vmatmul.mubr.msk.bf16.vlgmr.msra.gmra.mrb[0].mxu1 %vm341_vm1, %v587_v25 }
 0x236   : > { %v401_v32 = vpack.c.bf16 %v399_v31, %v399_v31  ;;  %1255 = vmatpush3.bf16.xpose.msra.mxu1 %v727_v30  ;;  %1256 = vmatprep.mubr.msk.bf16.mxu1 %vm1500_vm0, %v1499_v0  ;;  %400 = vst.msk [vmem:[%s1654_s13] sm:$0xff] %vm388_vm2, %v399_v31  ;;  %v1366_v30 = vld [vmem:[%s1827_s3 + $0x18] sm:$0xff]   ;;  %v1367_v31 = vld [vmem:[%s1827_s3 + $0x20] sm:$0xff]  }
 0x237   : > { %1266 = vmatprep.subr.bf16.mxu1 %v1499_v0 }
 0x238   : > { %1227 = vmatmul.mubr.msk.bf16.vlgmr.msra.gmra.mrb[4].mxu0 %vm388_vm2, %v401_v32  ;;  %v1368_v32 = vld [vmem:[%s1827_s3 + $0x28] sm:$0xff]  }
 0x239   : > { %1231 = vmatpush3.bf16.xpose.msra.mxu0 %v467_v33  ;;  %1232 = vmatprep.mubr.msk.bf16.mxu0 %vm1500_vm0, %v1499_v0 }
 0x23a   : > { %1236 = vmatprep.subr.bf16.mxu0 %v1499_v0 }
 0x23d   : > { %1257 = vmatmul.mubr.msk.bf16.vlgmr.msra.gmra.mrb[4].mxu1 %vm341_vm1, %v717_v34 }
 0x23e   : > { %1282 = vmatprep.mubr.msk.bf16.mxu1 %vm1500_vm0, %v1499_v0  ;;  %1267 = vmatpush3.bf16.msra.mxu1 %v1363_v27 }
 0x23f   : > { %1268 = vmatprep.subr.bf16.mxu1 %v1499_v0 }
 0x240   : > { %1233 = vmatmul.mubr.msk.bf16.vlgmr.msra.gmra.mrb[8].mxu0 %vm341_vm1, %v457_v23 }
 0x241   : > { %1238 = vmatprep.mubr.msk.bf16.mxu0 %vm1500_vm0, %v1499_v0 }
 0x242   : > { %1269 = vmatpush3.bf16.msra.mxu1 %v1364_v28 }
 0x243   : > { %1270 = vmatprep.subr.bf16.mxu1 %v1499_v0 }
 0x246   : > { %1271 = vmatpush3.bf16.msra.mxu1 %v1365_v29 }
 0x247   : > { %1272 = vmatprep.subr.bf16.mxu1 %v1499_v0 }
 0x24a   : > { %1273 = vmatpush3.bf16.msra.mxu1 %v1366_v30 }
 0x24b   : > { %1274 = vmatprep.subr.bf16.mxu1 %v1499_v0 }
 0x24e   : > { %1275 = vmatpush3.bf16.msra.mxu1 %v1367_v31 }
 0x24f   : > { %1276 = vmatprep.subr.bf16.mxu1 %v1499_v0 }
 0x252   : > { %1277 = vmatpush3.bf16.msra.mxu1 %v1368_v32 }
 0x253   : > { %1278 = vmatprep.subr.bf16.mxu1 %v1499_v0 }
 0x308   : > { %v633_v35 = vpop.f32.mrb[0].mxu1 }
 0x309   : > { %v1246_v36 = vpop.f32.mrb[1].mxu1  ;;  %v639_v37 = vsel %vm388_vm2, %v633_v35, -inf }
 0x30a   : > { %640 = vmax.xlane.f32.xlu0 %v639_v37  ;;  %v636_v38 = vpop.f32.mrb[2].mxu1  ;;  %v1369_v37 = vld [vmem:[%s1827_s3 + $0x30] sm:$0xff]  }
 0x30b   : > { %v443_v39 = vpop.f32.mrb[4].mxu0  ;;  %v1247_v40 = vpop.f32.mrb[3].mxu1  ;;  %1279 = vmatpush3.bf16.msra.mxu1 %v1369_v37  ;;  %v1370_v38 = vld [vmem:[%s1827_s3 + $0x38] sm:$0xff]  }
 0x30c   : > { %449 = vst.msk [vmem:[#allocation2] sm:$0xff] %vm341_vm1, %v443_v39  ;;  %v1228_v41 = vpop.f32.mrb[5].mxu0  ;;  %1280 = vmatprep.subr.bf16.mxu1 %v1499_v0 }
 0x30d   : > { %v446_v42 = vpop.f32.mrb[6].mxu0 }
 0x30e   : > { %v1229_v43 = vpop.f32.mrb[7].mxu0 }
 0x30f   : > { %1281 = vmatpush3.bf16.msra.mxu1 %v1370_v38 }
 0x310   : > { %v763_v44 = vpop.f32.mrb[4].mxu1 }
 0x311   : > { %v1258_v45 = vpop.f32.mrb[5].mxu1  ;;  %v769_v53 = vsel %vm388_vm2, %v763_v44, -inf }
 0x312   : > { %v766_v46 = vpop.f32.mrb[6].mxu1 }
 0x313   : > { %v503_v47 = vpop.f32.mrb[8].mxu0  ;;  %v1259_v48 = vpop.f32.mrb[7].mxu1 }
 0x314   : > { %v1234_v49 = vpop.f32.mrb[9].mxu0  ;;  %v509_v50 = vsel %vm388_vm2, %v503_v47, -inf }
 0x315   : > { %510 = vmax.xlane.f32.xlu1 %v509_v50  ;;  %v506_v51 = vpop.f32.mrb[10].mxu0 }
 0x316   : > { %v1235_v52 = vpop.f32.mrb[11].mxu0 }
 0x319   : > { %770 = vmax.xlane.f32.xlu1 %v769_v53 }
 0x397   : > { %v641_v54 = vpop.xlane.xlu0 %640 }
 0x398   : > { %v642_v55 = vsub.f32 %v633_v35, %v641_v54 }
 0x39a   : > { %v643_v56 = vmul.f32 1.442695, %v642_v55 }
 0x39c   : > { %1375 = vpow2.f32 %v643_v56 }
 0x3a2   : > { %v511_v57 = vpop.xlane.xlu1 %510 }
 0x3a3   : > { %v512_v58 = vsub.f32 %v503_v47, %v511_v57 }
 0x3a5   : > { %v513_v63 = vmul.f32 1.442695, %v512_v58 }
 0x3a6   : > { %v1376_v59 = vpop.eup %1375  ;;  %v771_v60 = vpop.xlane.xlu1 %770 }
 0x3a7   : > { %v772_v61 = vsub.f32 %v763_v44, %v771_v60  ;;  %v645_v62 = vsel %vm388_vm2, %v1376_v59, 0.0 }
 0x3a8   : > { %646 = vadd.xlane.f32.xlu0 %v645_v62 }
 0x3a9   : > { %v773_v1 = vmul.f32 1.442695, %v772_v61 }
 0x3ab   : > { %1377 = vpow2.f32 %v773_v1 }
 0x3ac   : > { %1379 = vpow2.f32 %v513_v63 }
 0x3b5   : > { %v1378_v2 = vpop.eup %1377 }
 0x3b6   : > { %v775_v3 = vsel %vm388_vm2, %v1378_v2, 0.0  ;;  %v1380_v4 = vpop.eup %1379 }
 0x3b7   : > { %776 = vadd.xlane.f32.xlu1 %v775_v3  ;;  %v515_v5 = vsel %vm388_vm2, %v1380_v4, 0.0 }
 0x3bb   : > { %516 = vadd.xlane.f32.xlu1 %v515_v5 }
 0x3be   : > { %526 = vrot.lane.b32.xlu0 %v1360_v6, %s1501_s19 }
 0x3cc   : > { %656 = vrot.lane.b32.xlu1 %v1361_v7, %s1502_s20 }
 0x3d0   : > { %786 = vrot.lane.b32.xlu1 %v1362_v8, %s1503_s27 }
 0x435   : > { %v647_v9 = vpop.xlane.xlu0 %646 }
 0x436   : > { %1381 = vrcp.f32 %v647_v9 }
 0x439   : > { %v527_v10 = vpop.permute.xlu0 %526 }
 0x43a   : > { %v532_v11 = vsel %vm405_vm3, %v527_v10, 0 }
 0x43b   : > { %1237 = vmatpush3.bf16.msra.mxu0 %v532_v11 }
 0x43c   : > { %1248 = vmatprep.subr.bf16.mxu0 %v1499_v0 }
 0x440   : > { %v1382_v12 = vpop.eup %1381 }
 0x441   : > { %v649_v13 = vmul.f32 %v1382_v12, %v1376_v59 }
 0x443   : > { %1165 = vst.msk [vmem:[%s1654_s13 + $0x10] sm:$0xff] %vm388_vm2, %v649_v13  ;;  %v652_v25 = vpack.c.bf16 %v649_v13, %v649_v13 }
 0x444   : > { %v777_v14 = vpop.xlane.xlu1 %776 }
 0x445   : > { %1383 = vrcp.f32 %v777_v14 }
 0x448   : > { %v517_v15 = vpop.xlane.xlu1 %516 }
 0x449   : > { %1385 = vrcp.f32 %v517_v15 }
 0x44c   : > { %v657_v19 = vpop.permute.xlu1 %656 }
 0x44d   : > { %v662_v21 = vsel %vm405_vm3, %v657_v19, 0 }
 0x44f   : > { %v1384_v16 = vpop.eup %1383 }
 0x450   : > { %v779_v17 = vmul.f32 %v1384_v16, %v1378_v2  ;;  %v787_v23 = vpop.permute.xlu1 %786 }
 0x451   : > { %v792_v24 = vsel %vm405_vm3, %v787_v23, 0 }
 0x452   : > { %1173 = vst.msk [vmem:[%s1654_s13 + $0x18] sm:$0xff] %vm388_vm2, %v779_v17  ;;  %v782_v26 = vpack.c.bf16 %v779_v17, %v779_v17 }
 0x453   : > { %v1386_v18 = vpop.eup %1385 }
 0x454   : > { %v519_v20 = vmul.f32 %v1386_v18, %v1380_v4 }
 0x456   : > { %v522_v22 = vpack.c.bf16 %v519_v20, %v519_v20  ;;  %1157 = vst.msk [vmem:[%s1654_s13 + $0x8] sm:$0xff] %vm388_vm2, %v519_v20 }
 0x458   : > { %1239 = vmatmul.mubr.msk.bf16.vlgmr.msra.gmra.mrb[12].mxu0 %vm388_vm2, %v522_v22 }
 0x459   : > { %1249 = vmatpush3.bf16.msra.mxu0 %v662_v21  ;;  %1250 = vmatprep.mubr.msk.bf16.mxu0 %vm1500_vm0, %v1499_v0 }
 0x45a   : > { %1260 = vmatprep.subr.bf16.mxu0 %v1499_v0 }
 0x460   : > { %1251 = vmatmul.mubr.msk.bf16.vlgmr.msra.gmra.mrb[16].mxu0 %vm388_vm2, %v652_v25 }
 0x461   : > { %1261 = vmatpush3.bf16.msra.mxu0 %v792_v24  ;;  %1262 = vmatprep.mubr.msk.bf16.mxu0 %vm1500_vm0, %v1499_v0 }
 0x468   : > { %1263 = vmatmul.mubr.msk.bf16.vlgmr.msra.gmra.mrb[20].mxu0 %vm388_vm2, %v782_v26 }
 0x52b   : > { %v568_v33 = vpop.f32.mrb[12].mxu0 }
 0x52c   : > { %575 = vrot.lane.b32.xlu0 %v568_v33, %s1503_s27  ;;  %v1240_v34 = vpop.f32.mrb[13].mxu0 }
 0x52d   : > { %v571_v35 = vpop.f32.mrb[14].mxu0 }
 0x52e   : > { %v1241_v36 = vpop.f32.mrb[15].mxu0 }
 0x533   : > { %v698_v39 = vpop.f32.mrb[16].mxu0 }
 0x534   : > { %705 = vrot.lane.b32.xlu1 %v698_v39, %s1502_s20  ;;  %v1252_v40 = vpop.f32.mrb[17].mxu0  ;;  %s1192_s20 = sshll.u32 %s1489_s24, 9 }
 0x535   : > { %v701_v41 = vpop.f32.mrb[18].mxu0  ;;  %s1742_s12 = scalar_lea.hbm %s1830_s6, %s1192_s20 }
 0x536   : > { %v1253_v42 = vpop.f32.mrb[19].mxu0 }
 0x53b   : > { %v828_v43 = vpop.f32.mrb[20].mxu0 }
 0x53c   : > { %835 = vrot.lane.b32.xlu0 %v828_v43, %s1501_s19  ;;  %v1264_v44 = vpop.f32.mrb[21].mxu0  ;;  %s988_s19 = sshll.u32 %s1654_s13, 4  ;;  %s1393_s13 = scalar_lea.vmem %s1392_s17, 1024  ;;  %s1736_s19 = int_to_ptr.vmem [resolvable:$true] %s988_s19 }
 0x53d   : > { %v831_v45 = vpop.f32.mrb[22].mxu0  ;;  %s1387_s15 = scalar_lea.vmem %s1736_s19, 512  ;;  %p1394_p1 = scmp.lt.s32.totalorder %s1736_s19, %s1392_s17 }
 0x53e   : > { %v1265_v46 = vpop.f32.mrb[23].mxu0  ;;  %p1388_p12 = scmp.ne.s32.totalorder %s1736_s19, %s1387_s15  ;;  %p1395_p2 = scmp.lt.s32.totalorder %s1393_s13, %s1387_s15 }
 0x540   : > { %p1389_p13 = pnand %p1388_p12, %p1583_p4  ;;  %p1396_p3 = por %p1395_p2, %p1394_p1 }
 0x542   : > { %p1390_p0 = pneg %p1389_p13 }
 0x544   : > { %p1397_p5 = pnand %p1396_p3, %p1390_p0 }
 0x59e   : > { %v576_v47 = vpop.permute.xlu0 %575 }
 0x59f   : > { %579 = vst.msk [vmem:[#allocation2] sm:$0xff] %vm578_vm4, %v576_v47 }
 0x5a6   : > { %v706_v0 = vpop.permute.xlu1 %705 }
 0x5a7   : > { %709 = vst.msk [vmem:[#allocation2] sm:$0xff] %vm708_vm5, %v706_v0 }
 0x5ae   : > { %v836_v48 = vpop.permute.xlu0 %835 }
 0x5af   : > { %839 = vst.msk [vmem:[#allocation2] sm:$0xff] %vm838_vm6, %v836_v48 }
 0x5b6   : > { %v840_v49 = vld [vmem:[#allocation2] sm:$0xff] }
 0x5b7   : > { %v841_v50 = vpack.c.bf16 %v840_v49, %v840_v49 }
 0x5b9   : > { %1283 = vmatmul.mubr.bf16.vlgmr.msra.gmra.mrb[8].mxu1 %v841_v50 }
 0x5ba   : > { %1400 = shalt.err (!%p1397_p5)
}
 0x5bb   : > { %s1401_s18 = scalar_lea.hbm %s1742_s12, 512  ;;  %s1405_s20 = scalar_lea.hbm %s1830_s6, 1024 }
 0x5bc   : > { %p1402_p6 = scmp.ne.s32.totalorder %s1742_s12, %s1401_s18  ;;  %p1406_p10 = scmp.lt.u32.totalorder %s1742_s12, %s1830_s6 }
 0x5bd   : > { %p1407_p11 = scmp.lt.u32.totalorder %s1405_s20, %s1401_s18  ;;  %p1409_p13 = scmp.lt.u32.totalorder %s1401_s18, %s1742_s12 }
 0x5be   : > { %p1403_p7 = pnand %p1402_p6, %p1583_p4 }
 0x5bf   : > { %p1408_p12 = por %p1407_p11, %p1406_p10 }
 0x5c0   : > { %p1404_p9 = pneg %p1403_p7 }
 0x5c1   : > { %p1410_p0 = por %p1409_p13, %p1408_p12 }
 0x5c3   : > { %p1411_p1 = pnand %p1410_p0, %p1404_p9 }
 0x5c5   : > { %1414 = shalt.err (!%p1411_p1)
}
 0x5c6   : > { %s1505_s15 = smov 128   ;;  %s1506_s16 = smov 8   ;;  %v1176_v51 = vld [vmem:[%s1828_s4] ss:$0 sm:$0xff] }
 0x5c7   : > { %1288 = dma.vmem_to_hbm [thread:$0]  (%p1583_p4), %s1736_s19, 512, %s1742_s12, %s960_s14, %s1505_s15, %s1505_s15, %s1506_s16  }
 0x5c8   : > { %s1143_s17 = sshll.u32 %s1646_s11, 3  ;;  %s1187_s18 = sshll.u32 %s1489_s24, 7 }
 0x5c9   : > { %s308_s30 = scalar_lea.vmem [#allocation3], %s1143_s17  ;;  %s1776_s0 = scalar_lea.hbm %s1829_s5, %s1187_s18 }
 0x5ca   : > { %s974_s20 = sshll.u32 %s308_s30, 4  ;;  %s955_s19 = scalar_lea.sflag [#allocation4], %s1646_s11  ;;  %s1778_s20 = int_to_ptr.vmem [resolvable:$true] %s974_s20 }
 0x5cb   : > { %s1415_s24 = scalar_lea.vmem %s1778_s20, 128  ;;  %s1507_s12 = smov [#allocation3]  }
 0x5cc   : > { %p1416_p2 = scmp.ne.s32.totalorder %s1778_s20, %s1415_s24  ;;  %s1419_s14 = sshll.u32 %s1507_s12, 4  ;;  %s1420_s14 = int_to_ptr.vmem [resolvable:$false] %s1419_s14 }
 0x5cd   : > { %s1421_s15 = scalar_lea.vmem %s1420_s14, 256  ;;  %p1422_p6 = scmp.lt.s32.totalorder %s1778_s20, %s1420_s14 }
 0x5ce   : > { %p1417_p3 = pnand %p1416_p2, %p1583_p4  ;;  %p1423_p7 = scmp.lt.s32.totalorder %s1421_s15, %s1415_s24 }
 0x5d0   : > { %p1418_p5 = pneg %p1417_p3  ;;  %p1424_p9 = por %p1423_p7, %p1422_p6 }
 0x5d2   : > { %p1425_p10 = pnand %p1424_p9, %p1418_p5 }
 0x68c   : > { %v947_v52 = vpop.f32.mrb[8].mxu1 }
 0x68d   : > { %v948_v53 = vadd.f32 %v1176_v51, %v947_v52  ;;  %v1284_v54 = vpop.f32.mrb[9].mxu1 }
 0x68e   : > { %v950_v55 = vpop.f32.mrb[10].mxu1 }
 0x68f   : > { %953 = vst [vmem:[%s308_s30] sm:$0xff] %v948_v53  ;;  %v1285_v56 = vpop.f32.mrb[11].mxu1 }
 0x690   : > { %1428 = shalt.err (!%p1425_p10)
}
 0x691   : > { %s1429_s11 = scalar_lea.hbm %s1776_s0, 128  ;;  %s1433_s13 = scalar_lea.hbm %s1829_s5, 256 }
 0x692   : > { %p1430_p11 = scmp.ne.s32.totalorder %s1776_s0, %s1429_s11  ;;  %p1434_p0 = scmp.lt.u32.totalorder %s1776_s0, %s1829_s5 }
 0x693   : > { %p1435_p1 = scmp.lt.u32.totalorder %s1433_s13, %s1429_s11  ;;  %p1437_p3 = scmp.lt.u32.totalorder %s1429_s11, %s1776_s0 }
 0x694   : > { %p1431_p12 = pnand %p1430_p11, %p1583_p4 }
 0x695   : > { %p1436_p2 = por %p1435_p1, %p1434_p0 }
 0x696   : > { %p1432_p13 = pneg %p1431_p12 }
 0x697   : > { %p1438_p5 = por %p1437_p3, %p1436_p2 }
 0x699   : > { %p1439_p6 = pnand %p1438_p5, %p1432_p13 }
 0x69b   : > { %1442 = shalt.err (!%p1439_p6)
}
 0x69c   : > { %1287 = dma.vmem_to_hbm [thread:$0]  (%p1583_p4), %s1778_s20, 128, %s1776_s0, %s955_s19  }
 0x69d PF: > { %p1298_p7 = scmp.ge.s32.totalorder %s1497_s26, 2  ;;  %s1003_s30 = sand.u32 1, %s1477_s21  }
 0x69e   : > { %s1004_s27 = scalar_lea.sflag [#allocation4], %s1003_s30 }
 0x69f   : > { %p1292_p9 = pnand %p1298_p7, %p1590_p8 }
 0x6a1   : > { %1468 = dma.done.wait (!%p1292_p9), %s1004_s27, 128  }
 0x6a2   : > { %1470 = vsyncadd (!%p1292_p9), %s1004_s27, 4294967168  ;;  %s1013_s8 = scalar_lea.sflag [#allocation6], %s1003_s30 }
 0x6a3   : > { %1472 = dma.done.wait (!%p1292_p9), %s1013_s8, 512  }
 0x6a4   : > { %1474 = vsyncadd (!%p1292_p9), %s1013_s8, 4294966784  ;;  %s23_s26 = sadd.s32 1, %s1497_s26   ;;  %s1835_s21 = smov %s1481_s22 }
 0x6a5   : > { %p20_p10 = scmp.ge.s32.totalorder %s23_s26, 4   ;;  %s1836_s22 = smov %s1485_s23 }
 0x6a6   : > { %s1837_s23 = smov %s1596_s10  ;;  %s1838_s24 = smov %s1493_s25 }
 0x6a7   : > { %s1839_s25 = smov %s1841_s29  ;;  %22 = sbr.rel (!%p20_p10) target bundleno = 8 (0x8), region = 101 }
 0x6ae   :  { %1018 = vsyncpa [#allocation4], 1 }
 0x6af   :  { %1020 = vsyncpa [#allocation4 + $0x1], 1 }
 0x6b0   :  { %1021 = vsyncpa [#allocation6], 1 }
 0x6b1   :  { %1023 = vsyncpa [#allocation6 + $0x1], 1 }

</bundles_post_ra>
